<compile_context>
chip_gen: v5e
topology: v5e:2x2
jax: 0.10.0
libtpu: 0.0.40
codegen_flags: <defaults>
</compile_context>

<pallas_src>
import jax
import jax.numpy as jnp
from jax.experimental import pallas as pl
from jax.experimental.pallas import tpu as pltpu

LANES = 128
SUBLANES = 8
ROW_ALIGN = 32          # legal sublane tiling for f32 / bf16 / int8 inputs
CHUNK_ROWS = 512        # 512 x 128 f32 = 256 KiB per chunk (~64 live vregs)
SENTINEL = 200.0        # softplus(-200) == 0 exactly in f32


def _round_up(a, b):
    return (a + b - 1) // b * b


def _max_tile_rows():
    """Per-generation streaming-tile ceiling (rows of 128 lanes)."""
    try:
        kind = jax.devices()[0].device_kind.lower()
    except Exception:
        kind = ""
    if "v6" in kind:
        return 16384    # 8 MiB f32 tile, 16 MiB double-buffered (32 MiB scoped default)
    if "v7" in kind:
        return 16384    # stays well under the ~24 MiB/TC double-buffer budget
    return 8192         # v5e / unknown: 4 MiB tile, 8 MiB double-buffered


def _make_kernel(tile_rows, chunk_rows, n_chunks, num_tiles, needs_mask,
                 full_rows, lane_rem):
    """Build the accumulation kernel with all sizes baked in as Python constants."""

    def accumulate(x_ref, acc_ref, t, masked):
        def body(k, carry):
            row0 = k * chunk_rows
            if n_chunks > 1:
                row0 = pl.multiple_of(row0, chunk_rows)
            x = x_ref[pl.ds(row0, chunk_rows), :].astype(jnp.float32)
            if masked:
                rows = jax.lax.broadcasted_iota(jnp.int32, (chunk_rows, LANES), 0)
                lanes = jax.lax.broadcasted_iota(jnp.int32, (chunk_rows, LANES), 1)
                grow = t * tile_rows + row0 + rows     # global 128-lane row index
                valid = grow < full_rows
                if lane_rem:
                    valid = valid | ((grow == full_rows) & (lanes < lane_rem))
                # Mask the *input* (not the loss) so undefined out-of-bounds
                # contents never reach exp/log1p.
                x = jnp.where(valid, x, SENTINEL)
            # Stable BCE-with-logits, target = 1:  max(x,0) - x + log1p(exp(-|x|))
            loss = jnp.maximum(x, 0.0) - x + jnp.log1p(jnp.exp(-jnp.abs(x)))
            # Sublane-aligned fold into the resident (8,128) accumulator (VPU adds).
            acc_ref[...] += loss.reshape(-1, SUBLANES, LANES).sum(axis=0)
            return carry

        if n_chunks == 1:
            body(0, 0)
        else:
            jax.lax.fori_loop(0, n_chunks, body, 0)

    def kernel(x_ref, acc_ref):
        t = pl.program_id(0)

        @pl.when(t == 0)
        def _():
            acc_ref[...] = jnp.zeros_like(acc_ref)

        if not needs_mask:
            accumulate(x_ref, acc_ref, t, masked=False)
        elif num_tiles == 1:
            accumulate(x_ref, acc_ref, t, masked=True)
        else:
            # Mask only the final tile; every other tile takes the fast path.
            @pl.when(t < num_tiles - 1)
            def _():
                accumulate(x_ref, acc_ref, t, masked=False)

            @pl.when(t == num_tiles - 1)
            def _():
                accumulate(x_ref, acc_ref, t, masked=True)

    return kernel


def onlyones_bce_with_logits_loss(logits):
    """mean over all elements of BCEWithLogits(logits, target=ones)."""
    n_valid = int(logits.size)
    if n_valid == 0:
        return jnp.float32(jnp.nan)   # matches torch's mean over an empty tensor

    x = jnp.ravel(logits)             # free reshape; keep original dtype (cast in-kernel)
    n_rows = pl.cdiv(n_valid, LANES)

    max_rows = _max_tile_rows()
    if n_rows <= CHUNK_ROWS:
        tile_rows = _round_up(n_rows, ROW_ALIGN)
        chunk_rows = tile_rows
    else:
        tile_rows = min(max_rows, _round_up(n_rows, CHUNK_ROWS))
        chunk_rows = CHUNK_ROWS
    n_chunks = tile_rows // chunk_rows
    num_tiles = pl.cdiv(n_rows, tile_rows)

    # Rows the 2-D lane-dense view must hold.  For multi-tile (large) inputs this is
    # just n_rows -> at most a <=127-element pad (only when size % 128 != 0).  Only
    # when the whole input fits in a single tile do we pad up to that one tile.
    view_rows = max(n_rows, tile_rows)
    pad = view_rows * LANES - n_valid
    if pad:
        x = jnp.pad(x, (0, pad))      # pad value irrelevant: masked in-kernel
    x2d = x.reshape(view_rows, LANES)

    needs_mask = (num_tiles * tile_rows * LANES) != n_valid
    full_rows = n_valid // LANES      # number of fully-valid 128-lane rows
    lane_rem = n_valid % LANES        # valid lanes in the final partial row

    kernel = _make_kernel(tile_rows, chunk_rows, n_chunks, num_tiles, needs_mask,
                          full_rows, lane_rem)

    itemsize = jnp.dtype(logits.dtype).itemsize
    cost = pl.CostEstimate(
        flops=5 * n_valid,
        transcendentals=2 * n_valid,
        bytes_accessed=n_valid * itemsize + SUBLANES * LANES * 4,
    )

    acc = pl.pallas_call(
        kernel,
        out_shape=jax.ShapeDtypeStruct((SUBLANES, LANES), jnp.float32),
        grid_spec=pltpu.PrefetchScalarGridSpec(
            num_scalar_prefetch=0,
            grid=(num_tiles,),
            in_specs=[pl.BlockSpec((tile_rows, LANES), lambda t: (t, 0))],
            # Resident (8,128) accumulator block across the whole reduction axis.
            out_specs=pl.BlockSpec((SUBLANES, LANES), lambda t: (0, 0)),
        ),
        compiler_params=pltpu.CompilerParams(dimension_semantics=("arbitrary",)),
        cost_estimate=cost,
    )(x2d)

    # Single cross-lane reduce + mean normalization outside the hot loop.
    return jnp.sum(acc) / jnp.float32(n_valid)


def _reference(logits):
    x = logits.astype(jnp.float32)
    loss = jnp.maximum(x, 0.0) - x + jnp.log1p(jnp.exp(-jnp.abs(x)))
    return jnp.mean(loss)


if __name__ == "__main__":
    key = jax.random.PRNGKey(0)
    # Small NCHW input consistent with a conv-net "logits" output.
    logits = jax.random.normal(key, (2, 4, 16, 16), dtype=jnp.float32) * 3.0

    out = onlyones_bce_with_logits_loss(logits)
    out = jax.block_until_ready(out)
    ref = _reference(logits)
    assert jnp.allclose(out, ref, atol=1e-5, rtol=1e-5), (out, ref)

    # Secondary check: size not a multiple of 128 exercises the in-kernel mask path.
    logits2 = jax.random.normal(jax.random.PRNGKey(0), (3, 5, 7), dtype=jnp.float32) * 2.0
    out2 = jax.block_until_ready(onlyones_bce_with_logits_loss(logits2))
    ref2 = _reference(logits2)
    assert jnp.allclose(out2, ref2, atol=1e-5, rtol=1e-5), (out2, ref2)

    print("KERNEL_OK")
</pallas_src>

<mosaic_0001>
module attributes {stable_mosaic.version = 11 : i64} {
  func.func @kernel(%arg0: i32, %arg1: memref<32x128xf32, #tpu.memory_space<vmem>>, %arg2: memref<8x128xf32, #tpu.memory_space<vmem>>) attributes {dimension_semantics = [#tpu.dimension_semantics<arbitrary>], iteration_bounds = array<i64: 1>, scalar_prefetch = 0 : i64, scratch_operands = 0 : i64, tpu.core_type = #tpu.core_type<tc>, window_params = [{transform_indices = @transform_0, window_bounds = array<i64: 32, 128>}, {pipeline_mode = #tpu.pipeline_mode<synchronous>, transform_indices = @transform_1, window_bounds = array<i64: 8, 128>}]} {
    %c0_i32 = arith.constant 0 : i32
    %0 = arith.cmpi eq, %arg0, %c0_i32 : i32
    %1 = arith.extui %0 : i1 to i32
    %c0_i32_0 = arith.constant 0 : i32
    %2 = arith.cmpi ne, %1, %c0_i32_0 : i32
    scf.if %2 {
      %cst_10 = arith.constant 0.000000e+00 : f32
      %27 = vector.broadcast %cst_10 : f32 to vector<8x128xf32>
      %c0_11 = arith.constant 0 : index
      %c0_12 = arith.constant 0 : index
      %28 = vector.load %arg2[%c0_11, %c0_12] : memref<8x128xf32, #tpu.memory_space<vmem>>, vector<8x128xf32>
      tpu.vector_store %arg2[%c0_11, %c0_12], %27 {strides = array<i32>} : memref<8x128xf32, #tpu.memory_space<vmem>>, vector<8x128xf32>,
    } else {
    }
    %c0 = arith.constant 0 : index
    %c0_1 = arith.constant 0 : index
    %3 = vector.load %arg1[%c0, %c0_1] : memref<32x128xf32, #tpu.memory_space<vmem>>, vector<32x128xf32>
    %4 = tpu.iota {dimensions = array<i32: 0>} : vector<32x128xi32>
    %c32_i32 = arith.constant 32 : i32
    %5 = arith.muli %arg0, %c32_i32 : i32
    %c0_i32_2 = arith.constant 0 : i32
    %6 = arith.addi %5, %c0_i32_2 : i32
    %7 = vector.broadcast %6 : i32 to vector<32x128xi32>
    %8 = arith.addi %7, %4 : vector<32x128xi32>
    %c16_i32 = arith.constant 16 : i32
    %9 = vector.broadcast %c16_i32 : i32 to vector<32x128xi32>
    %10 = arith.cmpi slt, %8, %9 : vector<32x128xi32>
    %cst = arith.constant 2.000000e+02 : f32
    %11 = vector.broadcast %cst : f32 to vector<32x128xf32>
    %12 = arith.select %10, %3, %11 : vector<32x128xi1>, vector<32x128xf32>
    %cst_3 = arith.constant 0.000000e+00 : f32
    %13 = vector.broadcast %cst_3 : f32 to vector<32x128xf32>
    %14 = arith.maximumf %12, %13 : vector<32x128xf32>
    %15 = arith.subf %14, %12 : vector<32x128xf32>
    %16 = math.absf %12 : vector<32x128xf32>
    %cst_4 = arith.constant 0.000000e+00 : f32
    %17 = vector.broadcast %cst_4 : f32 to vector<32x128xf32>
    %18 = arith.subf %17, %16 : vector<32x128xf32>
    %19 = math.exp %18 : vector<32x128xf32>
    %20 = math.log1p %19 : vector<32x128xf32>
    %21 = arith.addf %15, %20 : vector<32x128xf32>
    %c0_5 = arith.constant 0 : index
    %c0_6 = arith.constant 0 : index
    %22 = vector.load %arg2[%c0_5, %c0_6] : memref<8x128xf32, #tpu.memory_space<vmem>>, vector<8x128xf32>
    %23 = vector.shape_cast %21 : vector<32x128xf32> to vector<4x8x128xf32>
    %cst_7 = arith.constant dense<0.000000e+00> : vector<8x128xf32>
    %24 = vector.multi_reduction <add>, %23, %cst_7 [0] : vector<4x8x128xf32> to vector<8x128xf32>
    %25 = arith.addf %22, %24 : vector<8x128xf32>
    %c0_8 = arith.constant 0 : index
    %c0_9 = arith.constant 0 : index
    %26 = vector.load %arg2[%c0_8, %c0_9] : memref<8x128xf32, #tpu.memory_space<vmem>>, vector<8x128xf32>
    tpu.vector_store %arg2[%c0_8, %c0_9], %25 {strides = array<i32>} : memref<8x128xf32, #tpu.memory_space<vmem>>, vector<8x128xf32>,
    return
  }
  func.func @transform_0(%arg0: i32) -> (i32, i32) {
    %c0_i32 = arith.constant 0 : i32
    %c0_i32_0 = arith.constant 0 : i32
    return %arg0, %c0_i32 : i32, i32
  }
  func.func @transform_1(%arg0: i32) -> (i32, i32) {
    %c0_i32 = arith.constant 0 : i32
    %c0_i32_0 = arith.constant 0 : i32
    %c0_i32_1 = arith.constant 0 : i32
    return %c0_i32, %c0_i32_0 : i32, i32
  }
}

</mosaic_0001>

<bundles_post_ra>
// kernel: tpu_custom_call.1
= control target key start
LH: loop header
LB: loop body
LE: loop exit
PB: predicated region body
PF: predicated region fallthrough
CT: control target
= control target key end

     0   :  { %6 = vsyncpa [#allocation3], 0  ;;  %s231_s0 = inlined_call_operand.hbm [shape: f32[32,128], index: 0, kind: input, shape index: {}]   ;;  %s232_s1 = inlined_call_operand.hbm [shape: f32[8,128], index: 1, kind: output, shape index: {}]  }
   0x1   :  { %7 = vsyncpa [#allocation4], 0  ;;  %s12_s8 = sshll.u32 %s231_s0, 4  ;;  %s210_s9 = smov [#allocation2]   ;;  %s13_s8 = int_to_ptr.hbm [resolvable:$true] %s12_s8 }
   0x2   :  { %s14_s10 = sshll.u32 %s210_s9, 4  ;;  %s211_s11 = smov 128   ;;  %s15_s10 = int_to_ptr.vmem [resolvable:$true] %s14_s10 }
   0x3   :  { %s212_s12 = smov 8  }
   0x4   :  { %20 = dma.hbm_to_vmem [thread:$0]  %s13_s8, 512, %s15_s10, [#allocation3], %s211_s11, %s211_s11, %s212_s12  }
   0x5   :  { %206 = dma.done.wait [#allocation3], 512  }
   0x6   :  { %207 = vsyncadd [#allocation3], 4294966784  ;;  %v30_v0 = vld [vmem:[#allocation2] sm:$0xff]  ;;  %v31_v1 = vld [vmem:[#allocation2 + $0x8] sm:$0xff]  ;;  %v213_v4 = vmov -288.539  }
   0x7   :  { %v61_v2 = vand.u32 2147483647, %v30_v0  ;;  %v62_v3 = vand.u32 2147483647, %v31_v1  ;;  %146 = vpow2.f32 %v213_v4  ;;  %v53_v19 = vmax.f32 %v30_v0, 0.0  ;;  %s214_s0 = smov [#allocation5]  }
   0x8   :  { %v54_v22 = vmax.f32 %v31_v1, 0.0  ;;  %s128_s13 = sshll.u32 %s214_s0, 4  ;;  %s130_s16 = sshll.u32 %s232_s1, 4  ;;  %s129_s13 = int_to_ptr.vmem [resolvable:$true] %s128_s13  ;;  %s131_s16 = int_to_ptr.hbm [resolvable:$true] %s130_s16 }
   0x9   :  { %v65_v5 = vsub.f32 0.0, %v61_v2  ;;  %v66_v6 = vsub.f32 0.0, %v62_v3  ;;  %v57_v29 = vsub.f32 %v53_v19, %v30_v0 }
   0xa   :  { %v58_v32 = vsub.f32 %v54_v22, %v31_v1 }
   0xb   :  { %v69_v7 = vmul.f32 1.442695, %v65_v5  ;;  %v71_v8 = vmul.f32 1.442695, %v66_v6 }
   0xd   :  { %148 = vpow2.f32 %v69_v7  ;;  %v147_v9 = vpop.eup %146 }
   0xe   :  { %150 = vpow2.f32 %v71_v8  ;;  %v95_v10 = vadd.f32 1.0, %v147_v9  ;;  %v98_v17 = vmul.f32 -0.5, %v147_v9  ;;  %v101_v27 = vand.u32 2147483647, %v147_v9 }
  0x10   :  { %152 = vlog2.f32 %v95_v10  ;;  %v99_v24 = vadd.f32 1.0, %v98_v17  ;;  %vm102_vm2 = vcmp.lt.f32.partialorder %v101_v27, 0.0004427343 }
  0x12   :  { %v100_v36 = vmul.f32 %v147_v9, %v99_v24 }
  0x13   :  { %v149_v11 = vpop.eup %148 }
  0x14   :  { %v151_v12 = vpop.eup %150  ;;  %v77_v13 = vadd.f32 1.0, %v149_v11  ;;  %v80_v14 = vmul.f32 -0.5, %v149_v11  ;;  %v83_v20 = vand.u32 2147483647, %v149_v11 }
  0x15   :  { %v86_v15 = vadd.f32 1.0, %v151_v12  ;;  %v89_v16 = vmul.f32 -0.5, %v151_v12  ;;  %v92_v23 = vand.u32 2147483647, %v151_v12 }
  0x16   :  { %154 = vlog2.f32 %v77_v13  ;;  %v81_v18 = vadd.f32 1.0, %v80_v14  ;;  %v153_v25 = vpop.eup %152  ;;  %vm84_vm0 = vcmp.lt.f32.partialorder %v83_v20, 0.0004427343 }
  0x17   :  { %156 = vlog2.f32 %v86_v15  ;;  %v90_v21 = vadd.f32 1.0, %v89_v16  ;;  %vm93_vm1 = vcmp.lt.f32.partialorder %v92_v23, 0.0004427343  ;;  %v97_v35 = vmul.f32 0.6931472, %v153_v25 }
  0x18   :  { %v82_v26 = vmul.f32 %v149_v11, %v81_v18 }
  0x19   :  { %v91_v30 = vmul.f32 %v151_v12, %v90_v21  ;;  %v103_v41 = vsel %vm102_vm2, %v100_v36, %v97_v35 }
  0x1c   :  { %v155_v28 = vpop.eup %154 }
  0x1d   :  { %v157_v31 = vpop.eup %156  ;;  %v79_v33 = vmul.f32 0.6931472, %v155_v28 }
  0x1e   :  { %v88_v34 = vmul.f32 0.6931472, %v157_v31 }
  0x1f   :  { %v85_v37 = vsel %vm84_vm0, %v82_v26, %v79_v33 }
  0x20   :  { %v94_v38 = vsel %vm93_vm1, %v91_v30, %v88_v34  ;;  %v113_v39 = vadd.f32 %v85_v37, %v57_v29 }
  0x21   :  { %v114_v40 = vadd.f32 %v94_v38, %v58_v32 }
  0x23   :  { %v118_v42 = vadd.f32 %v114_v40, %v113_v39 }
  0x25   :  { %v119_v43 = vadd.f32 %v118_v42, %v103_v41 }
  0x27   :  { %v120_v44 = vadd.f32 %v119_v43, %v103_v41 }
  0x29   :  { %122 = vst [vmem:[#allocation5] sm:$0xff] %v120_v44 }
  0x2a   :  { %133 = dma.vmem_to_hbm [thread:$0]  %s129_s13, 128, %s131_s16, [#allocation4]  }
  0x2b   :  { %208 = dma.done.wait [#allocation4], 128  }
  0x2c   :  { %209 = vsyncadd [#allocation4], 4294967168 }
  0x2d   :  { %138 = vsyncpa [#allocation3], 1 }
  0x2e   :  { %139 = vsyncpa [#allocation4], 1 }

</bundles_post_ra>
